<compile_context>
chip_gen: v6e
topology: v6e:2x2x1
jax: 0.10.0
libtpu: 0.0.40
codegen_flags: <defaults>
</compile_context>

<pallas_src>
import functools

import jax
import jax.numpy as jnp
import numpy as np
from jax.experimental import pallas as pl
from jax.experimental.pallas import tpu as pltpu


def _attn_kernel(x_ref, wqkv_ref, wproj_ref, bproj_ref, o_ref, *,
                 seq, dim, heads, scale, mxu_dtype):
    hd = dim // heads

    x = x_ref[0]                                     # (N, C)   f32
    wqkv = wqkv_ref[...]                             # (C, 3C)  mxu_dtype
    wproj = wproj_ref[...]                           # (C, C)   mxu_dtype
    bproj = bproj_ref[...]                           # (1, C)   f32

    # One fused, full-K QKV projection on the MXU (f32 accumulation).
    qkv = jnp.dot(x.astype(mxu_dtype), wqkv,
                  preferred_element_type=jnp.float32)            # (N, 3C)

    # Split once into q/k/v; fold the softmax scale into q (N*C elements,
    # much cheaper than scaling the (H, N, N) score tile).
    q = (qkv[:, 0 * dim:1 * dim] * scale).reshape(seq, heads, hd)
    k = qkv[:, 1 * dim:2 * dim].reshape(seq, heads, hd)
    v = qkv[:, 2 * dim:3 * dim].reshape(seq, heads, hd)

    # Heads become the batch dim of single batched contractions (one
    # dot_general each instead of a per-head Python unroll).
    qh = jnp.transpose(q, (1, 0, 2)).astype(mxu_dtype)           # (H, N, hd)
    kh = jnp.transpose(k, (1, 0, 2)).astype(mxu_dtype)           # (H, N, hd)
    vh = jnp.transpose(v, (1, 0, 2)).astype(mxu_dtype)           # (H, N, hd)

    s = jnp.einsum("hnd,hmd->hnm", qh, kh,
                   preferred_element_type=jnp.float32)           # (H, N, N)

    # Numerically-stable softmax in f32; denominator via the EUP (vrcp).
    s = s - jnp.max(s, axis=-1, keepdims=True)
    p = jnp.exp(s)
    p = p * pl.reciprocal(jnp.sum(p, axis=-1, keepdims=True), approx=True)

    y = jnp.einsum("hnm,hmd->hnd", p.astype(mxu_dtype), vh,
                   preferred_element_type=jnp.float32)           # (H, N, hd)
    y = jnp.transpose(y, (1, 0, 2)).reshape(seq, dim).astype(mxu_dtype)

    # Single full-K output projection + bias + residual (f32).
    out = jnp.dot(y, wproj, preferred_element_type=jnp.float32) + bproj + x
    o_ref[0] = out.astype(o_ref.dtype)


def self_attention_single(x, wqkv_t, wproj_t, bproj, *, heads,
                          mxu_dtype=jnp.bfloat16):
    """x: (B, N, C) f32.  wqkv_t: (C, 3C).  wproj_t: (C, C).  bproj: (C,)."""
    B, N, C = x.shape
    assert C % heads == 0
    hd = C // heads
    scale = hd ** (-0.5)

    wqkv_mx = wqkv_t.astype(mxu_dtype)
    wproj_mx = wproj_t.astype(mxu_dtype)
    bproj2d = bproj.reshape(1, C).astype(jnp.float32)

    kernel = functools.partial(_attn_kernel, seq=N, dim=C, heads=heads,
                               scale=scale, mxu_dtype=mxu_dtype)

    # Advisory cost estimate so XLA schedules surrounding ops sensibly.
    flops = (2 * B * N * C * (3 * C)      # QKV projection
             + 4 * B * N * N * C          # scores + PV (all heads)
             + 2 * B * N * C * C)         # output projection
    cost = pl.CostEstimate(
        flops=flops,
        transcendentals=B * heads * N * N,                   # softmax exp
        bytes_accessed=(2 * B * N * C * 4                    # x in + out (f32)
                        + (C * 3 * C + C * C) * 2            # weights (bf16)
                        + C * 4))                            # bias (f32)

    out = pl.pallas_call(
        kernel,
        out_shape=jax.ShapeDtypeStruct((B, N, C), x.dtype),
        grid_spec=pltpu.PrefetchScalarGridSpec(
            num_scalar_prefetch=0,
            grid=(B,),                                       # one batch / step
            in_specs=[
                pl.BlockSpec((1, N, C), lambda b: (b, 0, 0)),     # x
                pl.BlockSpec((C, 3 * C), lambda b: (0, 0)),       # Wqkv^T
                pl.BlockSpec((C, C), lambda b: (0, 0)),           # Wproj^T
                pl.BlockSpec((1, C), lambda b: (0, 0)),           # bproj
            ],
            out_specs=pl.BlockSpec((1, N, C), lambda b: (b, 0, 0)),
        ),
        compiler_params=pltpu.CompilerParams(
            dimension_semantics=("parallel",),               # feeds both v7x TCs
        ),
        cost_estimate=cost,
    )(x, wqkv_mx, wproj_mx, bproj2d)

    return out


def _reference(x, wqkv_t, wproj_t, bproj, heads):
    B, N, C = x.shape
    hd = C // heads
    scale = hd ** (-0.5)
    qkv = x @ wqkv_t                                      # (B, N, 3C)
    qkv = qkv.reshape(B, N, 3, heads, hd).transpose(2, 0, 3, 1, 4)
    q, k, v = qkv[0], qkv[1], qkv[2]                      # (B, H, N, hd)
    attn = jnp.einsum("bhnd,bhmd->bhnm", q, k) * scale
    attn = jax.nn.softmax(attn, axis=-1)
    y = jnp.einsum("bhnm,bhmd->bhnd", attn, v)            # (B, H, N, hd)
    y = y.transpose(0, 2, 1, 3).reshape(B, N, C)
    y = y @ wproj_t + bproj.reshape(1, C)
    return y + x


if __name__ == "__main__":
    # Small shapes consistent with the module: B=2, N=8 tokens, C=64, 8 heads.
    B, N, C, heads = 2, 8, 64, 8

    key = jax.random.PRNGKey(0)
    kx, kqkv, kp, kb = jax.random.split(key, 4)

    x = jax.random.normal(kx, (B, N, C), dtype=jnp.float32)

    # PyTorch shapes: qkv.weight (3C, C), proj.weight (C, C), proj.bias (C,).
    wqkv = jax.random.normal(kqkv, (3 * C, C), dtype=jnp.float32) * 0.05
    wproj = jax.random.normal(kp, (C, C), dtype=jnp.float32) * 0.05
    bproj = jax.random.normal(kb, (C,), dtype=jnp.float32) * 0.05

    # Pass transposed weights so the kernel computes x @ W^T as plain matmuls.
    wqkv_t = wqkv.T                       # (C, 3C)
    wproj_t = wproj.T                     # (C, C)

    out = self_attention_single(x, wqkv_t, wproj_t, bproj, heads=heads)
    out = jax.block_until_ready(out)

    ref = _reference(x, wqkv_t, wproj_t, bproj, heads)
    # bf16 MXU operands (f32 accumulation) + approx reciprocal -> loosened tol.
    np.testing.assert_allclose(np.asarray(out), np.asarray(ref),
                               rtol=2e-2, atol=2e-2)

    print("KERNEL_OK")
</pallas_src>

<mosaic_0001>
module attributes {stable_mosaic.version = 11 : i64} {
  func.func @_attn_kernel(%arg0: i32, %arg1: memref<1x8x64xf32, #tpu.memory_space<vmem>>, %arg2: memref<64x192xbf16, #tpu.memory_space<vmem>>, %arg3: memref<64x64xbf16, #tpu.memory_space<vmem>>, %arg4: memref<1x64xf32, #tpu.memory_space<vmem>>, %arg5: memref<1x8x64xf32, #tpu.memory_space<vmem>>) attributes {dimension_semantics = [#tpu.dimension_semantics<parallel>], iteration_bounds = array<i64: 2>, scalar_prefetch = 0 : i64, scratch_operands = 0 : i64, tpu.core_type = #tpu.core_type<tc>, window_params = [{transform_indices = @transform_0, window_bounds = array<i64: 1, 8, 64>}, {pipeline_mode = #tpu.pipeline_mode<synchronous>, transform_indices = @transform_1, window_bounds = array<i64: 64, 192>}, {pipeline_mode = #tpu.pipeline_mode<synchronous>, transform_indices = @transform_2, window_bounds = array<i64: 64, 64>}, {pipeline_mode = #tpu.pipeline_mode<synchronous>, transform_indices = @transform_3, window_bounds = array<i64: 1, 64>}, {transform_indices = @transform_4, window_bounds = array<i64: 1, 8, 64>}]} {
    %c0 = arith.constant 0 : index
    %c0_0 = arith.constant 0 : index
    %c0_1 = arith.constant 0 : index
    %0 = vector.load %arg1[%c0, %c0_0, %c0_1] : memref<1x8x64xf32, #tpu.memory_space<vmem>>, vector<1x8x64xf32>
    %1 = vector.shape_cast %0 : vector<1x8x64xf32> to vector<8x64xf32>
    %c0_2 = arith.constant 0 : index
    %c0_3 = arith.constant 0 : index
    %2 = vector.load %arg2[%c0_2, %c0_3] : memref<64x192xbf16, #tpu.memory_space<vmem>>, vector<64x192xbf16>
    %c0_4 = arith.constant 0 : index
    %c0_5 = arith.constant 0 : index
    %3 = vector.load %arg3[%c0_4, %c0_5] : memref<64x64xbf16, #tpu.memory_space<vmem>>, vector<64x64xbf16>
    %c0_6 = arith.constant 0 : index
    %c0_7 = arith.constant 0 : index
    %4 = vector.load %arg4[%c0_6, %c0_7] : memref<1x64xf32, #tpu.memory_space<vmem>>, vector<1x64xf32>
    %5 = arith.truncf %1 : vector<8x64xf32> to vector<8x64xbf16>
    %cst = arith.constant dense<0.000000e+00> : vector<8x192xf32>
    %6 = tpu.matmul %5, %2, %cst {dimension_numbers = #tpu.dot_dimension_numbers<[1], [0], [0], [1], [0, 0, 1, 1], [], []>} : vector<8x64xbf16>, vector<64x192xbf16>, vector<8x192xf32> -> vector<8x192xf32>
    %7 = vector.extract_strided_slice %6 {offsets = [0, 0], sizes = [8, 64], strides = [1, 1]} : vector<8x192xf32> to vector<8x64xf32>
    %cst_8 = arith.constant 0.353553385 : f32
    %8 = vector.broadcast %cst_8 : f32 to vector<8x64xf32>
    %9 = arith.mulf %7, %8 : vector<8x64xf32>
    %10 = vector.shape_cast %9 : vector<8x64xf32> to vector<8x8x8xf32>
    %11 = vector.extract_strided_slice %6 {offsets = [0, 64], sizes = [8, 64], strides = [1, 1]} : vector<8x192xf32> to vector<8x64xf32>
    %12 = vector.shape_cast %11 : vector<8x64xf32> to vector<8x8x8xf32>
    %13 = vector.extract_strided_slice %6 {offsets = [0, 128], sizes = [8, 64], strides = [1, 1]} : vector<8x192xf32> to vector<8x64xf32>
    %14 = vector.shape_cast %13 : vector<8x64xf32> to vector<8x8x8xf32>
    %15 = tpu.transpose %10, [1, 0, 2] : vector<8x8x8xf32> -> vector<8x8x8xf32>
    %16 = arith.truncf %15 : vector<8x8x8xf32> to vector<8x8x8xbf16>
    %17 = tpu.transpose %12, [1, 0, 2] : vector<8x8x8xf32> -> vector<8x8x8xf32>
    %18 = arith.truncf %17 : vector<8x8x8xf32> to vector<8x8x8xbf16>
    %19 = tpu.transpose %14, [1, 0, 2] : vector<8x8x8xf32> -> vector<8x8x8xf32>
    %20 = arith.truncf %19 : vector<8x8x8xf32> to vector<8x8x8xbf16>
    "tpu.trace_start"() <{level = 10 : i32, message = "hnd,hmd->hnm"}> : () -> ()
    %cst_9 = arith.constant dense<0.000000e+00> : vector<8x8x8xf32>
    %21 = tpu.matmul %16, %18, %cst_9 {dimension_numbers = #tpu.dot_dimension_numbers<[2], [2], [1], [1], [0, 0, 0, 1, 1, 1], [0], [0]>} : vector<8x8x8xbf16>, vector<8x8x8xbf16>, vector<8x8x8xf32> -> vector<8x8x8xf32>
    "tpu.trace_stop"() : () -> ()
    %cst_10 = arith.constant dense<0xFF800000> : vector<8x8xf32>
    %22 = vector.multi_reduction <maximumf>, %21, %cst_10 [2] : vector<8x8x8xf32> to vector<8x8xf32>
    %23 = vector.shape_cast %22 : vector<8x8xf32> to vector<8x8x1xf32>
    %24 = vector.broadcast %23 : vector<8x8x1xf32> to vector<8x8x8xf32>
    %25 = arith.subf %21, %24 : vector<8x8x8xf32>
    %26 = math.exp %25 : vector<8x8x8xf32>
    %cst_11 = arith.constant dense<0.000000e+00> : vector<8x8xf32>
    %27 = vector.multi_reduction <add>, %26, %cst_11 [2] : vector<8x8x8xf32> to vector<8x8xf32>
    %28 = vector.shape_cast %27 : vector<8x8xf32> to vector<8x8x1xf32>
    %29 = tpu.reciprocal %28 {approx = true} : vector<8x8x1xf32> -> vector<8x8x1xf32>
    %30 = vector.broadcast %29 : vector<8x8x1xf32> to vector<8x8x8xf32>
    %31 = arith.mulf %26, %30 : vector<8x8x8xf32>
    %32 = arith.truncf %31 : vector<8x8x8xf32> to vector<8x8x8xbf16>
    "tpu.trace_start"() <{level = 10 : i32, message = "hnm,hmd->hnd"}> : () -> ()
    %cst_12 = arith.constant dense<0.000000e+00> : vector<8x8x8xf32>
    %33 = tpu.matmul %32, %20, %cst_12 {dimension_numbers = #tpu.dot_dimension_numbers<[2], [1], [1], [2], [0, 0, 0, 1, 1, 2], [0], [0]>} : vector<8x8x8xbf16>, vector<8x8x8xbf16>, vector<8x8x8xf32> -> vector<8x8x8xf32>
    "tpu.trace_stop"() : () -> ()
    %34 = tpu.transpose %33, [1, 0, 2] : vector<8x8x8xf32> -> vector<8x8x8xf32>
    %35 = vector.shape_cast %34 : vector<8x8x8xf32> to vector<8x64xf32>
    %36 = arith.truncf %35 : vector<8x64xf32> to vector<8x64xbf16>
    %cst_13 = arith.constant dense<0.000000e+00> : vector<8x64xf32>
    %37 = tpu.matmul %36, %3, %cst_13 {dimension_numbers = #tpu.dot_dimension_numbers<[1], [0], [0], [1], [0, 0, 1, 1], [], []>} : vector<8x64xbf16>, vector<64x64xbf16>, vector<8x64xf32> -> vector<8x64xf32>
    %38 = vector.broadcast %4 : vector<1x64xf32> to vector<8x64xf32>
    %39 = arith.addf %37, %38 : vector<8x64xf32>
    %40 = arith.addf %39, %1 : vector<8x64xf32>
    %c0_14 = arith.constant 0 : index
    %c0_15 = arith.constant 0 : index
    %c0_16 = arith.constant 0 : index
    %41 = vector.load %arg5[%c0_14, %c0_15, %c0_16] : memref<1x8x64xf32, #tpu.memory_space<vmem>>, vector<1x8x64xf32>
    %42 = vector.shape_cast %41 : vector<1x8x64xf32> to vector<8x64xf32>
    %43 = vector.shape_cast %40 : vector<8x64xf32> to vector<1x8x64xf32>
    tpu.vector_store %arg5[%c0_14, %c0_15, %c0_16], %43 {strides = array<i32>} : memref<1x8x64xf32, #tpu.memory_space<vmem>>, vector<1x8x64xf32>,
    return
  }
  func.func @transform_0(%arg0: i32) -> (i32, i32, i32) {
    %c0_i32 = arith.constant 0 : i32
    %c0_i32_0 = arith.constant 0 : i32
    %c0_i32_1 = arith.constant 0 : i32
    return %arg0, %c0_i32, %c0_i32_0 : i32, i32, i32
  }
  func.func @transform_1(%arg0: i32) -> (i32, i32) {
    %c0_i32 = arith.constant 0 : i32
    %c0_i32_0 = arith.constant 0 : i32
    %c0_i32_1 = arith.constant 0 : i32
    return %c0_i32, %c0_i32_0 : i32, i32
  }
  func.func @transform_2(%arg0: i32) -> (i32, i32) {
    %c0_i32 = arith.constant 0 : i32
    %c0_i32_0 = arith.constant 0 : i32
    %c0_i32_1 = arith.constant 0 : i32
    return %c0_i32, %c0_i32_0 : i32, i32
  }
  func.func @transform_3(%arg0: i32) -> (i32, i32) {
    %c0_i32 = arith.constant 0 : i32
    %c0_i32_0 = arith.constant 0 : i32
    %c0_i32_1 = arith.constant 0 : i32
    return %c0_i32, %c0_i32_0 : i32, i32
  }
  func.func @transform_4(%arg0: i32) -> (i32, i32, i32) {
    %c0_i32 = arith.constant 0 : i32
    %c0_i32_0 = arith.constant 0 : i32
    %c0_i32_1 = arith.constant 0 : i32
    return %arg0, %c0_i32, %c0_i32_0 : i32, i32, i32
  }
}

</mosaic_0001>

<bundles_post_ra>
// kernel: tpu_custom_call.1
= control target key start
LH: loop header
LB: loop body
LE: loop exit
PB: predicated region body
PF: predicated region fallthrough
CT: control target
= control target key end

     0   :  { %9 = vsyncpa [#allocation3], 0  ;;  %s3751_s0 = inlined_call_operand.hbm [shape: f32[2,8,64], index: 0, kind: input, shape index: {}]   ;;  %s3752_s1 = inlined_call_operand.hbm [shape: bf16[64,192], index: 1, kind: input, shape index: {}]   ;;  %s3753_s2 = inlined_call_operand.hbm [shape: bf16[64,64], index: 2, kind: input, shape index: {}]   ;;  %s3754_s3 = inlined_call_operand.vmem [shape: f32[1,64], index: 3, kind: input, shape index: {}]   ;;  %s3755_s4 = inlined_call_operand.hbm [shape: f32[2,8,64], index: 4, kind: output, shape index: {}]  }
   0x1   :  { %11 = vsyncpa [#allocation3 + $0x1], 0 }
   0x2   :  { %12 = vsyncpa [#allocation6], 0 }
   0x3   :  { %13 = vsyncpa [#allocation4], 0 }
   0x4   :  { %15 = vsyncpa [#allocation4 + $0x1], 0  ;;  %s3164_s15 = smov 0   ;;  %s3166_s16 = smov 0  }
   0x5   :  { %s3168_s17 = smov 0   ;;  %s3170_s18 = smov 0  }
   0x6 LB: > { %s3185_s19 = sadd.s32 4294967295, %s3109_s18   ;;  %s2597_s20 = sadd.s32 4294967294, %s3109_s18   ;;  %s3109_s18 = sphi %s3170_s18, %s3777_s18   ;;  %s3105_s17 = sphi %s3168_s17, %s3776_s17   ;;  %s3101_s16 = sphi %s3166_s16, %s3775_s16   ;;  %s3097_s15 = sphi %s3164_s15, %s3774_s15  }
   0x7   : > { %p41_p0 = scmp.ne.s32.totalorder %s3101_s16, %s3097_s15  ;;  %p3756_p1 = scmp.eq.s32.totalorder %s3185_s19, 0 }
   0x8   : > { %p134_p3 = scmp.eq.s32.totalorder %s2597_s20, 1  ;;  %p2598_p5 = scmp.ge.s32.totalorder %s3109_s18, 1 }
   0x9   : > { %p3194_p4 = por %p3756_p1, %p41_p0  ;;  %p141_p7 = scmp.lt.s32.totalorder %s3109_s18, 3 }
   0xa   : > { %p3199_p6 = por %p134_p3, %p41_p0  ;;  %s3111_s24 = smov [#allocation5]  }
   0xb   : > { %s3760_s21 = scalar_select %p3194_p4, 1, 0 }
   0xc   : > { %s3761_s22 = scalar_select %p3199_p6, 1, 0 }
   0xd   : > { %p3204_p8 = pnand %p2598_p5, %p141_p7  ;;  %s153_s25 = sshll.u32 %s3111_s24, 4  ;;  %s154_s25 = int_to_ptr.vmem [resolvable:$true] %s153_s25 }
   0xe   : > { %s3112_s27 = smov [#allocation7]   ;;  %s2972_s29 = scalar_lea.vmem %s154_s25, 1024 }
   0xf   : > { %s3762_s23 = scalar_select %p3204_p8, 1, 0 }
  0x10   : > { %p2833_p9 = pneg %p3204_p8  ;;  %s166_s28 = sshll.u32 %s3112_s27, 4  ;;  %s167_s28 = int_to_ptr.vmem [resolvable:$true] %s166_s28 }
  0x11   : > { %p2973_p13 = scmp.ne.s32.totalorder %s154_s25, %s2972_s29  ;;  %p2980_p5 = scmp.lt.s32.totalorder %s154_s25, %s154_s25 }
  0x12   : > { %p3213_p11 = pnand %p2833_p9, %p3756_p1  ;;  %p2981_p7 = scmp.lt.s32.totalorder %s2972_s29, %s2972_s29 }
  0x14   : > { %p2963_p12 = pneg %p3213_p11  ;;  %p2982_p10 = por %p2981_p7, %p2980_p5 }
  0x16   : > { %p2975_p0 = pnand %p2973_p13, %p2963_p12 }
  0x18   : > { %p2976_p3 = pneg %p2975_p0 }
  0x1a   : > { %p2983_p9 = pnand %p2982_p10, %p2976_p3 }
  0x1c   : > { %2986 = shalt.err (!%p2983_p9)
}
  0x1d   : > { %s3113_s30 = smov 128   ;;  %s3114_s5 = smov 8  }
  0x1e   : > { %2836 = dma.hbm_to_vmem [thread:$0]  (!%p3213_p11), %s3752_s1, 1024, %s154_s25, [#allocation6], %s3113_s30, %s3113_s30, %s3114_s5  }
  0x1f   : > { %s2998_s8 = scalar_lea.vmem %s167_s28, 512  ;;  %p3006_p2 = scmp.lt.s32.totalorder %s167_s28, %s167_s28 }
  0x20   : > { %p2999_p1 = scmp.ne.s32.totalorder %s167_s28, %s2998_s8  ;;  %p3007_p6 = scmp.lt.s32.totalorder %s2998_s8, %s2998_s8 }
  0x22   : > { %p3001_p13 = pnand %p2999_p1, %p2963_p12  ;;  %p3008_p5 = por %p3007_p6, %p3006_p2 }
  0x24   : > { %p3002_p0 = pneg %p3001_p13 }
  0x26   : > { %p3009_p10 = pnand %p3008_p5, %p3002_p0 }
  0x28   : > { %3012 = shalt.err (!%p3009_p10)
}
  0x29   : > { %s3115_s9 = smov 64   ;;  %s3116_s10 = smov 4  }
  0x2a   : > { %2839 = dma.hbm_to_vmem [thread:$0]  (!%p3213_p11), %s3753_s2, 512, %s167_s28, [#allocation6], %s3115_s9, %s3115_s9, %s3116_s10  }
  0x2b   : > { %s3236_s13 = sadd.s32 1, %s3109_s18   ;;  %s28_s20 = sadd.s32 1, %s3105_s17 }
  0x2c   : > { %s25_s14 = ssub.s32 %s3109_s18, %s3236_s13  ;;  %p35_p2 = scmp.ne.s32.totalorder %s3105_s17, %s3101_s16 }
  0x2d   : > { %p26_p1 = scmp.eq.s32.totalorder %s25_s14, 0  ;;  %p36_p6 = scmp.eq.s32.totalorder %s3109_s18, 0 }
  0x2e   : > { %p3764_p3 = scmp.eq.s32.totalorder %s3185_s19, 1  ;;  %p2850_p9 = scmp.lt.s32.totalorder %s3109_s18, 2 }
  0x2f   : > { %s3245_s24 = scalar_select %p26_p1, %s3105_s17, %s28_s20  }
  0x30   : > { %p37_p12 = por %p36_p6, %p35_p2  ;;  %p3249_p7 = por %p3764_p3, %p35_p2 }
  0x31   : > { %s183_s26 = sand.u32 1, %s3105_s17   ;;  %s2603_s28 = sshll.u32 %s3109_s18, 7 }
  0x32   : > { %s3765_s25 = scalar_select %p3249_p7, 1, 0 }
  0x33   : > { %s2602_s27 = sshll.u32 %s183_s26, 3  ;;  %s3259_s5 = scalar_lea.hbm %s3751_s0, %s2603_s28 }
  0x34   : > { %s187_s6 = scalar_lea.vmem [#allocation2], %s2602_s27  ;;  %p3261_p11 = pnand %p2850_p9, %p37_p12 }
  0x35   : > { %s194_s7 = sshll.u32 %s187_s6, 4  ;;  %s184_s9 = scalar_lea.sflag [#allocation3], %s183_s26  ;;  %s195_s7 = int_to_ptr.vmem [resolvable:$true] %s194_s7 }
  0x36   : > { %s3013_s10 = scalar_lea.hbm %s3259_s5, 128  ;;  %p3015_p0 = pneg %p3261_p11 }
  0x37   : > { %p3014_p13 = scmp.ne.s32.totalorder %s3259_s5, %s3013_s10  ;;  %s3018_s14 = scalar_lea.hbm %s3751_s0, 256 }
  0x38   : > { %p3019_p1 = scmp.lt.s32.totalorder %s3259_s5, %s3751_s0  ;;  %p3020_p2 = scmp.lt.s32.totalorder %s3018_s14, %s3013_s10 }
  0x39   : > { %p3016_p5 = pnand %p3015_p0, %p3014_p13 }
  0x3a   : > { %p3021_p6 = por %p3020_p2, %p3019_p1 }
  0x3b   : > { %p3017_p10 = pneg %p3016_p5 }
  0x3d   : > { %p3022_p12 = pnand %p3021_p6, %p3017_p10 }
  0x3f   : > { %3025 = shalt.err (!%p3022_p12)
}
  0x40   : > { %s3026_s28 = scalar_lea.vmem %s195_s7, 128  ;;  %s3117_s26 = smov [#allocation2]  }
  0x41   : > { %p3027_p3 = scmp.ne.s32.totalorder %s195_s7, %s3026_s28  ;;  %s3031_s29 = sshll.u32 %s3117_s26, 4  ;;  %s3032_s29 = int_to_ptr.vmem [resolvable:$false] %s3031_s29 }
  0x42   : > { %s3033_s30 = scalar_lea.vmem %s3032_s29, 256  ;;  %p3034_p13 = scmp.lt.s32.totalorder %s195_s7, %s3032_s29 }
  0x43   : > { %p3029_p9 = pnand %p3027_p3, %p3015_p0  ;;  %p3035_p5 = scmp.lt.s32.totalorder %s3033_s30, %s3026_s28 }
  0x45   : > { %p3030_p7 = pneg %p3029_p9  ;;  %p3036_p4 = por %p3035_p5, %p3034_p13 }
  0x47   : > { %p3037_p8 = pnand %p3036_p4, %p3030_p7 }
  0x49   : > { %3040 = shalt.err (!%p3037_p8)
}
  0x4a   : > { %2843 = dma.hbm_to_vmem [thread:$0]  (!%p3261_p11), %s3259_s5, 128, %s195_s7, %s184_s9  }
  0x4b   : > { %p3767_p10 = scmp.ne.s32.totalorder %s3762_s23, 0 }
  0x4c   : > { %s3282_s6 = sand.u32 (!%p3767_p10), 1, %s3101_s16   ;;  %p3768_p4 = scmp.ne.s32.totalorder (!%p3767_p10), %s3760_s21, 0 }
  0x4d   : > { %203 = sbr.rel (%p3767_p10) target bundleno = 1703 (0x6a7), region = 36  ;;  %s2605_s10 = sshll.u32 (!%p3767_p10), %s3282_s6, 3 }
  0x4e   : > { %s206_s11 = scalar_lea.sflag (!%p3767_p10), [#allocation3], %s3282_s6  ;;  %s3288_s12 = scalar_lea.vmem (!%p3767_p10), [#allocation2], %s2605_s10 }
  0x52   : > { %3084 = dma.done.wait (%p3768_p4), %s206_s11, 128  }
  0x53   : > { %3086 = vsyncadd (%p3768_p4), %s206_s11, 4294967168  ;;  %p3769_p8 = scmp.eq.s32.totalorder %s3185_s19, 0 }
  0x55   : > { %3088 = dma.done.wait (%p3769_p8), [#allocation6], 1536   ;;  %p3770_p7 = pmov %p3769_p8 }
  0x56   : > { %v3118_v0 = vmov 0   ;;  %v2912_v1 = vld [vmem:[#allocation5 + $0x34] ss:$8 sps:$4 sm:$0xff]   ;;  %v2914_v2 = vld [vmem:[#allocation5 + $0x30] ss:$8 sps:$4 sm:$0xff]   ;;  %vm302_vm0 = vcmask 523264   ;;  %v375_v26 = vlaneseq }
  0x57   : > { %3090 = vsyncadd (%p3770_p7), [#allocation6], 4294965760  ;;  %338 = vmatprep.mubr.bf16.mxu0 %v3118_v0  ;;  %314 = vmatprep.subr.bf16.mxu0 %v2912_v1  ;;  %v2915_v3 = vld [vmem:[#allocation5 + $0x24] ss:$8 sps:$4 sm:$0xff]   ;;  %v2917_v4 = vld [vmem:[#allocation5 + $0x20] ss:$8 sps:$4 sm:$0xff]  }
  0x58   : > { %315 = vmatpush1.bf16.msra.mxu0 %v2914_v2  ;;  %v2918_v5 = vld [vmem:[#allocation5 + $0x14] ss:$8 sps:$4 sm:$0xff]   ;;  %v2920_v6 = vld [vmem:[#allocation5 + $0x10] ss:$8 sps:$4 sm:$0xff]   ;;  %v2921_v7 = vld [vmem:[#allocation5 + $0x4] ss:$8 sps:$4 sm:$0xff]  }
  0x59   : > { %316 = vmatprep.subr.bf16.mxu0 %v2915_v3  ;;  %v2923_v8 = vld [vmem:[#allocation5] ss:$8 sps:$4 sm:$0xff]   ;;  %v243_v9 = vld [vmem:[%s3288_s12] sm:$0xff]  ;;  %s3119_s21 = smov 104   ;;  %s3120_s23 = smov 120   ;;  %v3127_v21 = vmov 0.0  }
  0x5a   : > { %v261_v10 = vpack.c.bf16 %v243_v9, %v243_v9  ;;  %s3121_s5 = smov 96   ;;  %s3122_s7 = smov 112   ;;  %2713 = vmatprep.subr.bf16.mxu1 %v3127_v21  ;;  %vm3128_vm1 = vmmov 0   ;;  %v3129_v24 = vmov 1983009808   ;;  %v376_v30 = vshrl.u32 %v375_v26, 7 }
  0x5b   : > { %s3123_s8 = smov 80   ;;  %s3124_s9 = smov 88   ;;  %2715 = vmatprep.mubr.msk.bf16.mxu1 %vm3128_vm1, %v3127_v21  ;;  %v373_v25 = vunpack.c.l.s4 %v3129_v24  ;;  %v3130_v27 = vmov 1934713408   ;;  %vm1271_vm2 = vcmask 64512   ;;  %vm1739_vm3 = vcmask 1043456  }
  0x5c   : > { %317 = vmatpush1.bf16.msra.mxu0 %v2917_v4  ;;  %s3125_s14 = smov 64   ;;  %s3126_s20 = smov 72   ;;  %v437_v28 = vunpack.c.l.s4 %v3130_v27  ;;  %vm2406_vm4 = vcmask 130048   ;;  %vm2408_vm5 = vcmask 195584   ;;  %vm2410_vm6 = vcmask 261120  }
  0x5d   : > { %318 = vmatprep.subr.bf16.mxu0 %v2918_v5  ;;  %v374_v29 = vunpack.c.0.s8 %v373_v25  ;;  %s3131_s27 = smov 16   ;;  %s3132_s28 = smov 8   ;;  %vm2412_vm7 = vcmask 326656   ;;  %vm2414_vm8 = vcmask 392192   ;;  %vm2416_vm9 = vcmask 457728  }
  0x5e   : > { %v438_v33 = vunpack.c.0.s8 %v437_v28  ;;  %s3133_s26 = smov 24   ;;  %s3134_s29 = smov 40  }
  0x5f   : > { %v3337_v34 = vsub.s32 %v374_v29, %v376_v30  ;;  %s3135_s30 = smov 32   ;;  %s3136_s11 = smov 56  }
  0x60   : > { %319 = vmatpush1.bf16.msra.mxu0 %v2920_v6  ;;  %v3339_v41 = vsub.s32 %v438_v33, %v376_v30  ;;  %p3771_p0 = scmp.ne.s32.totalorder %s3765_s25, 0 }
  0x61   : > { %320 = vmatprep.subr.bf16.mxu0 %v2921_v7 }
  0x64   : > { %321 = vmatpush1.bf16.msra.mxu0 %v2923_v8 }
  0x65   : > { %2737 = vmatprep.subr.bf16.mxu0 %v3127_v21 }
  0x67   : > { %2617 = vmatmul.mubr.msk.bf16.vlgmr.msra.gmra.mxu0 %vm302_vm0, %v261_v10 }
  0x68   : > { %2739 = vmatprep.mubr.msk.bf16.mxu0 %vm3128_vm1, %v3127_v21 }
 0x127   : > { %v340_v11 = vpop.f32.mrf.mxu0 }
 0x128   : > { %511 = vrot.lane.b32.xlu1 %v340_v11, %s3119_s21  ;;  %507 = vrot.lane.b32.xlu0 %v340_v11, %s3120_s23  ;;  %v3309_v18 = vmul.f32 0.35355338, %v340_v11 }
 0x129   : > { %v3302_v12 = vpop.f32.mrf.mxu0 }
 0x12b   : > { %v344_v13 = vpop.f32.mrf.mxu0 }
 0x12c   : > { %513 = vrot.lane.b32.xlu1 %v340_v11, %s3121_s5  ;;  %509 = vrot.lane.b32.xlu0 %v340_v11, %s3122_s7 }
 0x12d   : > { %v345_v14 = vpop.f32.mrf.mxu0 }
 0x130   : > { %517 = vrot.lane.b32.xlu1 %v340_v11, %s3123_s8  ;;  %515 = vrot.lane.b32.xlu0 %v340_v11, %s3124_s9 }
 0x134   : > { %521 = vrot.lane.b32.xlu1 %v340_v11, %s3125_s14  ;;  %519 = vrot.lane.b32.xlu0 %v340_v11, %s3126_s20 }
 0x19a   : > { %v508_v15 = vpop.permute.xlu0 %507  ;;  %v512_v16 = vpop.permute.xlu1 %511 }
 0x19b   : > { %523 = vrot.lane.b32.xlu0 %v508_v15, %s3125_s14 }
 0x19e   : > { %v510_v17 = vpop.permute.xlu0 %509  ;;  %v514_v19 = vpop.permute.xlu1 %513 }
 0x19f   : > { %527 = vrot.lane.b32.xlu0 %v512_v16, %s3125_s14  ;;  %525 = vrot.lane.b32.xlu1 %v510_v17, %s3125_s14 }
 0x1a2   : > { %v516_v20 = vpop.permute.xlu0 %515  ;;  %v518_v22 = vpop.permute.xlu1 %517 }
 0x1a3   : > { %352 = vrot.lane.b32.xlu0 %v3309_v18, %s3122_s7  ;;  %349 = vrot.lane.b32.xlu1 %v3309_v18, %s3120_s23 }
 0x1a6   : > { %v520_v23 = vpop.permute.xlu0 %519  ;;  %v522_v31 = vpop.permute.xlu1 %521 }
 0x1a7   : > { %529 = vrot.lane.b32.xlu0 %v514_v19, %s3125_s14  ;;  %355 = vrot.lane.b32.xlu1 %v3309_v18, %s3119_s21 }
 0x1ab   : > { %533 = vrot.lane.b32.xlu0 %v518_v22, %s3125_s14  ;;  %531 = vrot.lane.b32.xlu1 %v516_v20, %s3125_s14 }
 0x1af   : > { %358 = vrot.lane.b32.xlu0 %v3309_v18, %s3121_s5  ;;  %535 = vrot.lane.b32.xlu1 %v520_v23, %s3125_s14 }
 0x1b3   : > { %364 = vrot.lane.b32.xlu0 %v3309_v18, %s3123_s8  ;;  %361 = vrot.lane.b32.xlu1 %v3309_v18, %s3124_s9 }
 0x1b7   : > { %367 = vrot.lane.b32.xlu1 %v3309_v18, %s3126_s20  ;;  %685 = vrot.lane.b32.xlu0 %v3302_v12, %s3122_s7  ;;  %s2673_s7 = sshll.u32 %s3185_s19, 7  ;;  %s2495_s19 = scalar_lea.sflag [#allocation4], %s3282_s6 }
 0x1bb   : > { %682 = vrot.lane.b32.xlu1 %v3302_v12, %s3120_s23 }
 0x1bf   : > { %688 = vrot.lane.b32.xlu1 %v3302_v12, %s3119_s21  ;;  %s3137_s21 = smov 48  }
 0x20d   : > { %v524_v32 = vpop.permute.xlu0 %523 }
 0x211   : > { %v526_v35 = vpop.permute.xlu1 %525  ;;  %v528_v36 = vpop.permute.xlu0 %527 }
 0x212   : > { %v545_v37 = vcombine.low %v522_v31, %v526_v35  ;;  %v546_v38 = vcombine.high %v522_v31, %v526_v35  ;;  %v561_v39 = vcombine.low %v524_v32, %v528_v36  ;;  %v562_v40 = vcombine.high %v524_v32, %v528_v36 }
 0x214   : > { %v553_v42 = vrot.slane %v545_v37, %v3337_v34  ;;  %v560_v43 = vrot.slane %v546_v38, %v3337_v34  ;;  %v569_v44 = vrot.slane %v561_v39, %v3337_v34  ;;  %v576_v45 = vrot.slane %v562_v40, %v3337_v34 }
 0x215   : > { %v353_v46 = vpop.permute.xlu0 %352  ;;  %v350_v47 = vpop.permute.xlu1 %349 }
 0x216   : > { %v609_v48 = vcombine.low %v553_v42, %v569_v44  ;;  %v610_v49 = vcombine.high %v553_v42, %v569_v44  ;;  %v625_v50 = vcombine.low %v560_v43, %v576_v45  ;;  %v626_v51 = vcombine.high %v560_v43, %v576_v45 }
 0x217   : > { %v370_v56 = vcombine.low %v3309_v18, %v353_v46  ;;  %v371_v57 = vcombine.high %v3309_v18, %v353_v46 }
 0x218   : > { %v617_v52 = vrot.slane %v609_v48, %v3339_v41  ;;  %v624_v53 = vrot.slane %v610_v49, %v3339_v41  ;;  %v633_v54 = vrot.slane %v625_v50, %v3339_v41  ;;  %v640_v55 = vrot.slane %v626_v51, %v3339_v41 }
 0x219   : > { %v530_v58 = vpop.permute.xlu0 %529  ;;  %v356_v59 = vpop.permute.xlu1 %355  ;;  %v378_v6 = vrot.slane %v370_v56, %v3337_v34  ;;  %v385_v7 = vrot.slane %v371_v57, %v3337_v34 }
 0x21a   : > { %v2626_v60 = vcombine.low %v617_v52, %v624_v53  ;;  %v2628_v61 = vcombine.high %v617_v52, %v624_v53  ;;  %v2630_v62 = vcombine.low %v633_v54, %v640_v55  ;;  %v2632_v63 = vcombine.high %v633_v54, %v640_v55 }
 0x21b   : > { %v386_v0 = vcombine.low %v350_v47, %v356_v59  ;;  %v387_v1 = vcombine.high %v350_v47, %v356_v59 }
 0x21c   : > { %v3352_v2 = vrot.slane %v2626_v60, %v3337_v34  ;;  %v3355_v3 = vrot.slane %v2628_v61, %v3337_v34  ;;  %v3358_v4 = vrot.slane %v2630_v62, %v3337_v34  ;;  %v3361_v5 = vrot.slane %v2632_v63, %v3337_v34 }
 0x21d   : > { %v394_v8 = vrot.slane %v386_v0, %v3337_v34  ;;  %v401_v9 = vrot.slane %v387_v1, %v3337_v34  ;;  %v534_v10 = vpop.permute.xlu0 %533  ;;  %v532_v11 = vpop.permute.xlu1 %531 }
 0x21e   : > { %v577_v13 = vcombine.low %v530_v58, %v534_v10  ;;  %v1047_v14 = vcombine.low %v3352_v2, %v3355_v3  ;;  %v1079_v15 = vcombine.low %v3358_v4, %v3361_v5  ;;  %v578_v20 = vcombine.high %v530_v58, %v534_v10 }
 0x21f   : > { %v434_v16 = vcombine.low %v378_v6, %v394_v8  ;;  %v435_v17 = vcombine.high %v378_v6, %v394_v8  ;;  %v450_v18 = vcombine.low %v385_v7, %v401_v9  ;;  %v451_v19 = vcombine.high %v385_v7, %v401_v9 }
 0x220   : > { %v1055_v22 = vrot.slane %v1047_v14, %v3339_v41  ;;  %v1087_v23 = vrot.slane %v1079_v15, %v3339_v41  ;;  %v585_v36 = vrot.slane %v577_v13, %v3337_v34  ;;  %v592_v39 = vrot.slane %v578_v20, %v3337_v34 }
 0x221   : > { %v442_v24 = vrot.slane %v434_v16, %v3339_v41  ;;  %v449_v25 = vrot.slane %v435_v17, %v3339_v41  ;;  %v458_v26 = vrot.slane %v450_v18, %v3339_v41  ;;  %v465_v27 = vrot.slane %v451_v19, %v3339_v41  ;;  %v359_v28 = vpop.permute.xlu0 %358  ;;  %v536_v29 = vpop.permute.xlu1 %535 }
 0x222   : > { %v593_v30 = vcombine.low %v532_v11, %v536_v29  ;;  %v594_v31 = vcombine.high %v532_v11, %v536_v29  ;;  %v1111_v32 = vcombine.low %v1055_v22, %v1087_v23  ;;  %v1112_v37 = vcombine.high %v1055_v22, %v1087_v23 }
 0x223   : > { %v2618_v33 = vcombine.low %v442_v24, %v449_v25  ;;  %v2620_v35 = vcombine.high %v442_v24, %v449_v25  ;;  %v2622_v38 = vcombine.low %v458_v26, %v465_v27  ;;  %v2624_v45 = vcombine.high %v458_v26, %v465_v27 }
 0x224   : > { %v601_v40 = vrot.slane %v593_v30, %v3337_v34  ;;  %v608_v42 = vrot.slane %v594_v31, %v3337_v34  ;;  %v1119_v48 = vpack.c.bf16 %v1111_v32, %v1111_v32  ;;  %v1120_v55 = vpack.c.bf16 %v1112_v37, %v1112_v37 }
 0x225   : > { %v3382_v43 = vrot.slane %v2618_v33, %v3337_v34  ;;  %v3385_v44 = vrot.slane %v2620_v35, %v3337_v34  ;;  %v365_v46 = vpop.permute.xlu0 %364  ;;  %v362_v47 = vpop.permute.xlu1 %361  ;;  %v3392_v60 = vrot.slane %v2622_v38, %v3337_v34  ;;  %v3395_v61 = vrot.slane %v2624_v45, %v3337_v34 }
 0x226   : > { %v641_v49 = vcombine.low %v585_v36, %v601_v40  ;;  %v642_v50 = vcombine.high %v585_v36, %v601_v40  ;;  %v657_v51 = vcombine.low %v592_v39, %v608_v42  ;;  %v658_v52 = vcombine.high %v592_v39, %v608_v42 }
 0x227   : > { %v402_v53 = vcombine.low %v359_v28, %v365_v46  ;;  %v403_v54 = vcombine.high %v359_v28, %v365_v46  ;;  %v1276_v62 = vsel %vm1271_vm2, %v1119_v48, 0  ;;  %v903_v1 = vcombine.low %v3382_v43, %v3385_v44 }
 0x228   : > { %v649_v56 = vrot.slane %v641_v49, %v3339_v41  ;;  %v656_v57 = vrot.slane %v642_v50, %v3339_v41  ;;  %v665_v58 = vrot.slane %v657_v51, %v3339_v41  ;;  %v672_v59 = vrot.slane %v658_v52, %v3339_v41  ;;  %2714 = vmatpush3.bf16.xpose.msra.mxu1 %v1276_v62 }
 0x229   : > { %v368_v63 = vpop.permute.xlu1 %367  ;;  %v686_v0 = vpop.permute.xlu0 %685  ;;  %v904_v10 = vcombine.high %v3382_v43, %v3385_v44  ;;  %2719 = vmatprep.subr.bf16.mxu1 %v3127_v21  ;;  %v410_v16 = vrot.slane %v402_v53, %v3337_v34  ;;  %v417_v17 = vrot.slane %v403_v54, %v3337_v34  ;;  %v911_v27 = vrot.slane %v903_v1, %v3339_v41 }
 0x22a   : > { %v2627_v6 = vcombine.low %v649_v56, %v656_v57  ;;  %v2629_v7 = vcombine.high %v649_v56, %v656_v57  ;;  %v2631_v8 = vcombine.low %v665_v58, %v672_v59  ;;  %v2633_v9 = vcombine.high %v665_v58, %v672_v59 }
 0x22b   : > { %v418_v11 = vcombine.low %v362_v47, %v368_v63  ;;  %v419_v13 = vcombine.high %v362_v47, %v368_v63  ;;  %v703_v14 = vcombine.low %v3302_v12, %v686_v0  ;;  %v704_v18 = vcombine.high %v3302_v12, %v686_v0 }
 0x22c   : > { %v3405_v15 = vrot.slane %v2627_v6, %v3337_v34  ;;  %v3411_v19 = vrot.slane %v2629_v7, %v3337_v34  ;;  %v3414_v20 = vrot.slane %v2631_v8, %v3337_v34  ;;  %v3419_v25 = vrot.slane %v2633_v9, %v3337_v34 }
 0x22d   : > { %v426_v22 = vrot.slane %v418_v11, %v3337_v34  ;;  %v433_v23 = vrot.slane %v419_v13, %v3337_v34  ;;  %v683_v24 = vpop.permute.xlu1 %682  ;;  %v711_v26 = vrot.slane %v703_v14, %v3337_v34  ;;  %v935_v28 = vcombine.low %v3392_v60, %v3395_v61 }
 0x22e   : > { %v718_v33 = vrot.slane %v704_v18, %v3337_v34  ;;  %v1322_v36 = vsel %vm1271_vm2, %v1120_v55, 0  ;;  %v1048_v37 = vcombine.high %v3352_v2, %v3355_v3  ;;  %v1080_v49 = vcombine.high %v3358_v4, %v3361_v5 }
 0x22f   : > { %v466_v29 = vcombine.low %v410_v16, %v426_v22  ;;  %v467_v30 = vcombine.high %v410_v16, %v426_v22  ;;  %v482_v31 = vcombine.low %v417_v17, %v433_v23  ;;  %v483_v32 = vcombine.high %v417_v17, %v433_v23 }
 0x230   : > { %v943_v35 = vrot.slane %v935_v28, %v3339_v41  ;;  %v1063_v55 = vcombine.low %v3405_v15, %v3411_v19  ;;  %v936_v0 = vcombine.high %v3392_v60, %v3395_v61  ;;  %v1062_v7 = vrot.slane %v1048_v37, %v3339_v41 }
 0x231   : > { %v474_v38 = vrot.slane %v466_v29, %v3339_v41  ;;  %v481_v39 = vrot.slane %v467_v30, %v3339_v41  ;;  %v490_v40 = vrot.slane %v482_v31, %v3339_v41  ;;  %v497_v42 = vrot.slane %v483_v32, %v3339_v41  ;;  %v689_v45 = vpop.permute.xlu1 %688 }
 0x232   : > { %v967_v46 = vcombine.low %v911_v27, %v943_v35  ;;  %v719_v47 = vcombine.low %v683_v24, %v689_v45  ;;  %v720_v48 = vcombine.high %v683_v24, %v689_v45  ;;  %v968_v6 = vcombine.high %v911_v27, %v943_v35 }
 0x233   : > { %v2619_v50 = vcombine.low %v474_v38, %v481_v39  ;;  %v2621_v51 = vcombine.high %v474_v38, %v481_v39  ;;  %v2623_v52 = vcombine.low %v490_v40, %v497_v42  ;;  %v2625_v53 = vcombine.high %v490_v40, %v497_v42 }
 0x234   : > { %v975_v2 = vpack.c.bf16 %v967_v46, %v967_v46  ;;  %v727_v3 = vrot.slane %v719_v47, %v3337_v34  ;;  %v734_v54 = vrot.slane %v720_v48, %v3337_v34  ;;  %v1094_v61 = vrot.slane %v1080_v49, %v3339_v41 }
 0x235   : > { %v3441_v56 = vrot.slane %v2619_v50, %v3337_v34  ;;  %v3444_v57 = vrot.slane %v2621_v51, %v3337_v34  ;;  %v3447_v4 = vrot.slane %v2623_v52, %v3337_v34  ;;  %v3450_v5 = vrot.slane %v2625_v53, %v3337_v34 }
 0x236   : > { %2716 = vmatmul.mubr.msk.bf16.vlgmr.msra.gmra.mxu1 %vm1271_vm2, %v975_v2  ;;  %v767_v58 = vcombine.low %v711_v26, %v727_v3  ;;  %v768_v59 = vcombine.high %v711_v26, %v727_v3  ;;  %v783_v62 = vcombine.low %v718_v33, %v734_v54  ;;  %v784_v63 = vcombine.high %v718_v33, %v734_v54 }
 0x237   : > { %v919_v1 = vcombine.low %v3441_v56, %v3444_v57  ;;  %2720 = vmatpush3.bf16.xpose.msra.mxu1 %v1322_v36  ;;  %2721 = vmatprep.mubr.msk.bf16.mxu1 %vm3128_vm1, %v3127_v21  ;;  %v951_v60 = vcombine.low %v3447_v4, %v3450_v5  ;;  %v1071_v14 = vrot.slane %v1063_v55, %v3339_v41 }
 0x238   : > { %v775_v8 = vrot.slane %v767_v58, %v3339_v41  ;;  %v782_v9 = vrot.slane %v768_v59, %v3339_v41  ;;  %v791_v11 = vrot.slane %v783_v62, %v3339_v41  ;;  %v798_v13 = vrot.slane %v784_v63, %v3339_v41  ;;  %2725 = vmatprep.subr.bf16.mxu1 %v3127_v21 }
 0x239   : > { %v1095_v16 = vcombine.low %v3414_v20, %v3419_v25  ;;  %v1113_v24 = vcombine.low %v1062_v7, %v1094_v61  ;;  %v976_v27 = vpack.c.bf16 %v968_v6, %v968_v6  ;;  %v918_v28 = vrot.slane %v904_v10, %v3339_v41 }
 0x23a   : > { %v2634_v17 = vcombine.low %v775_v8, %v782_v9  ;;  %v2636_v18 = vcombine.high %v775_v8, %v782_v9  ;;  %v2638_v22 = vcombine.low %v791_v11, %v798_v13  ;;  %v2640_v23 = vcombine.high %v791_v11, %v798_v13 }
 0x23b   : > { %v1103_v26 = vrot.slane %v1095_v16, %v3339_v41  ;;  %v950_v29 = vrot.slane %v936_v0, %v3339_v41  ;;  %v3478_v30 = vrot.slane %v919_v1, %v3339_v41  ;;  %v1121_v32 = vpack.c.bf16 %v1113_v24, %v1113_v24 }
 0x23c   : > { %v1135_v31 = vrot.slane %v2634_v17, %v3337_v34  ;;  %v3482_v35 = vrot.slane %v951_v60, %v3339_v41  ;;  %v1151_v36 = vrot.slane %v2636_v18, %v3337_v34  ;;  %v1167_v37 = vrot.slane %v2638_v22, %v3337_v34 }
 0x23d   : > { %v1115_v33 = vcombine.low %v1071_v14, %v1103_v26  ;;  %v1064_v43 = vcombine.high %v3405_v15, %v3411_v19  ;;  %v1096_v44 = vcombine.high %v3414_v20, %v3419_v25  ;;  %v1183_v10 = vrot.slane %v2640_v23, %v3337_v34 }
 0x23e   : > { %2722 = vmatmul.mubr.msk.bf16.vlgmr.msra.gmra.mxu1 %vm1271_vm2, %v976_v27  ;;  %v1368_v38 = vsel %vm1271_vm2, %v1121_v32, 0  ;;  %v1114_v40 = vcombine.high %v1062_v7, %v1094_v61  ;;  %v969_v15 = vcombine.low %v918_v28, %v950_v29  ;;  %v971_v19 = vcombine.low %v3478_v30, %v3482_v35 }
 0x23f   : > { %v1123_v39 = vpack.c.bf16 %v1115_v33, %v1115_v33  ;;  %2727 = vmatprep.mubr.msk.bf16.mxu1 %vm3128_vm1, %v3127_v21  ;;  %2726 = vmatpush3.bf16.xpose.msra.mxu1 %v1368_v38  ;;  %v1078_v42 = vrot.slane %v1064_v43, %v3339_v41  ;;  %v1110_v45 = vrot.slane %v1096_v44, %v3339_v41 }
 0x240   : > { %2731 = vmatprep.subr.bf16.mxu1 %v3127_v21  ;;  %v920_v20 = vcombine.high %v3441_v56, %v3444_v57  ;;  %v952_v25 = vcombine.high %v3447_v4, %v3450_v5  ;;  %v1191_v48 = vcombine.low %v1135_v31, %v1151_v36  ;;  %v1122_v49 = vpack.c.bf16 %v1114_v40, %v1114_v40 }
 0x241   : > { %v1460_v46 = vsel %vm1271_vm2, %v1123_v39, 0  ;;  %v1117_v47 = vcombine.low %v1078_v42, %v1110_v45  ;;  %v1223_v50 = vcombine.low %v1167_v37, %v1183_v10  ;;  %v977_v52 = vpack.c.bf16 %v969_v15, %v969_v15 }
 0x242   : > { %2738 = vmatpush3.bf16.xpose.msra.mxu0 %v1460_v46  ;;  %v1199_v51 = vrot.slane %v1191_v48, %v3339_v41  ;;  %v979_v53 = vpack.c.bf16 %v971_v19, %v971_v19  ;;  %v934_v54 = vrot.slane %v920_v20, %v3339_v41  ;;  %v966_v55 = vrot.slane %v952_v25, %v3339_v41 }
 0x243   : > { %2749 = vmatprep.subr.bf16.mxu0 %v3127_v21  ;;  %v1125_v2 = vpack.c.bf16 %v1117_v47, %v1117_v47  ;;  %v1231_v3 = vrot.slane %v1223_v50, %v3339_v41  ;;  %v1192_v56 = vcombine.high %v1135_v31, %v1151_v36  ;;  %v1414_v57 = vsel %vm1271_vm2, %v1122_v49, 0 }
 0x244   : > { %v1116_v4 = vcombine.high %v1071_v14, %v1103_v26  ;;  %v1224_v58 = vcombine.high %v1167_v37, %v1183_v10  ;;  %v970_v63 = vcombine.high %v918_v28, %v950_v29  ;;  %v973_v1 = vcombine.low %v934_v54, %v966_v55 }
 0x245   : > { %v1255_v5 = vcombine.low %v1199_v51, %v1231_v3  ;;  %v1206_v59 = vrot.slane %v1192_v56, %v3339_v41  ;;  %v1552_v62 = vsel %vm1271_vm2, %v1125_v2, 0  ;;  %v1118_v14 = vcombine.high %v1078_v42, %v1110_v45 }
 0x246   : > { %2728 = vmatmul.mubr.msk.bf16.vlgmr.msra.gmra.mxu1 %vm1271_vm2, %v977_v52  ;;  %v1238_v0 = vrot.slane %v1224_v58, %v3339_v41  ;;  %v1124_v6 = vpack.c.bf16 %v1116_v4, %v1116_v4  ;;  %v978_v11 = vpack.c.bf16 %v970_v63, %v970_v63  ;;  %v981_v13 = vpack.c.bf16 %v973_v1, %v973_v1 }
 0x247   : > { %2732 = vmatpush3.bf16.xpose.msra.mxu1 %v1414_v57  ;;  %2733 = vmatprep.mubr.msk.bf16.mxu1 %vm3128_vm1, %v3127_v21  ;;  %v1263_v7 = vpack.c.bf16 %v1255_v5, %v1255_v5  ;;  %v972_v16 = vcombine.high %v3478_v30, %v3482_v35  ;;  %v1126_v17 = vpack.c.bf16 %v1118_v14, %v1118_v14 }
 0x248   : > { %2743 = vmatprep.subr.bf16.mxu1 %v3127_v21  ;;  %v3522_v8 = vcombine.low %v1206_v59, %v1238_v0  ;;  %v3524_v9 = vcombine.high %v1206_v59, %v1238_v0  ;;  %v1506_v60 = vsel %vm1271_vm2, %v1124_v6, 0  ;;  %v1256_v23 = vcombine.high %v1199_v51, %v1231_v3 }
 0x249   : > { %2740 = vmatmul.mubr.msk.bf16.vlgmr.msra.gmra.mxu0 %vm1271_vm2, %v979_v53  ;;  %v1741_v61 = vsel %vm1739_vm3, %v1263_v7, 0  ;;  %v980_v18 = vpack.c.bf16 %v972_v16, %v972_v16  ;;  %v1598_v22 = vsel %vm1271_vm2, %v1126_v17, 0  ;;  %v974_v24 = vcombine.high %v934_v54, %v966_v55 }
 0x24a   : > { %2750 = vmatpush3.bf16.xpose.msra.mxu0 %v1552_v62  ;;  %2751 = vmatprep.mubr.msk.bf16.mxu0 %vm3128_vm1, %v3127_v21  ;;  %v1264_v26 = vpack.c.bf16 %v1256_v23, %v1256_v23 }
 0x24b   : > { %2761 = vmatprep.subr.bf16.mxu0 %v3127_v21  ;;  %v982_v27 = vpack.c.bf16 %v974_v24, %v974_v24 }
 0x24c   : > { %v1787_v28 = vsel %vm1739_vm3, %v1264_v26, 0 }
 0x24e   : > { %2734 = vmatmul.mubr.msk.bf16.vlgmr.msra.gmra.mxu1 %vm1271_vm2, %v978_v11 }
 0x24f   : > { %2744 = vmatpush3.bf16.xpose.msra.mxu1 %v1506_v60  ;;  %2745 = vmatprep.mubr.msk.bf16.mxu1 %vm3128_vm1, %v3127_v21 }
 0x250   : > { %2755 = vmatprep.subr.bf16.mxu1 %v3127_v21 }
 0x251   : > { %2752 = vmatmul.mubr.msk.bf16.vlgmr.msra.gmra.mxu0 %vm1271_vm2, %v981_v13 }
 0x252   : > { %2762 = vmatpush3.bf16.msra.mxu0 %v1741_v61  ;;  %2763 = vmatprep.mubr.msk.bf16.mxu0 %vm3128_vm1, %v3127_v21 }
 0x253   : > { %2773 = vmatprep.subr.bf16.mxu0 %v3127_v21 }
 0x256   : > { %2746 = vmatmul.mubr.msk.bf16.vlgmr.msra.gmra.mxu1 %vm1271_vm2, %v980_v18 }
 0x257   : > { %2756 = vmatpush3.bf16.xpose.msra.mxu1 %v1598_v22  ;;  %2757 = vmatprep.mubr.msk.bf16.mxu1 %vm3128_vm1, %v3127_v21 }
 0x258   : > { %2767 = vmatprep.subr.bf16.mxu1 %v3127_v21 }
 0x25e   : > { %2758 = vmatmul.mubr.msk.bf16.vlgmr.msra.gmra.mxu1 %vm1271_vm2, %v982_v27 }
 0x25f   : > { %2768 = vmatpush3.bf16.msra.mxu1 %v1787_v28  ;;  %2769 = vmatprep.mubr.msk.bf16.mxu1 %vm3128_vm1, %v3127_v21 }
 0x260   : > { %2779 = vmatprep.subr.bf16.mxu1 %v3127_v21 }
 0x2f6   : > { %v1312_v29 = vpop.f32.mrf.mxu1 }
 0x2f7   : > { %v1640_v30 = vsel %vm1271_vm2, %v1312_v29, -inf }
 0x2f8   : > { %v2717_v31 = vpop.f32.mrf.mxu1  ;;  %1641 = vmax.xlane.f32.xlu0 %v1640_v30 }
 0x2fa   : > { %v1315_v32 = vpop.f32.mrf.mxu1 }
 0x2fc   : > { %v2718_v33 = vpop.f32.mrf.mxu1 }
 0x2fe   : > { %v1358_v35 = vpop.f32.mrf.mxu1 }
 0x2ff   : > { %v1643_v19 = vsel %vm1271_vm2, %v1358_v35, -inf }
 0x300   : > { %v2723_v36 = vpop.f32.mrf.mxu1 }
 0x302   : > { %v1361_v37 = vpop.f32.mrf.mxu1 }
 0x304   : > { %v2724_v43 = vpop.f32.mrf.mxu1 }
 0x306   : > { %v1404_v44 = vpop.f32.mrf.mxu1 }
 0x307   : > { %v1646_v10 = vsel %vm1271_vm2, %v1404_v44, -inf }
 0x308   : > { %v2729_v39 = vpop.f32.mrf.mxu1  ;;  %1647 = vmax.xlane.f32.xlu0 %v1646_v10 }
 0x309   : > { %v1496_v38 = vpop.f32.mrf.mxu0 }
 0x30a   : > { %v1652_v40 = vsel %vm1271_vm2, %v1496_v38, -inf  ;;  %v1407_v45 = vpop.f32.mrf.mxu1 }
 0x30b   : > { %1653 = vmax.xlane.f32.xlu1 %v1652_v40  ;;  %v2741_v42 = vpop.f32.mrf.mxu0 }
 0x30c   : > { %v2730_v15 = vpop.f32.mrf.mxu1 }
 0x30d   : > { %v1499_v46 = vpop.f32.mrf.mxu0 }
 0x30e   : > { %v1450_v25 = vpop.f32.mrf.mxu1 }
 0x30f   : > { %1644 = vmax.xlane.f32.xlu1 %v1643_v19  ;;  %v2742_v20 = vpop.f32.mrf.mxu0  ;;  %v1649_v47 = vsel %vm1271_vm2, %v1450_v25, -inf }
 0x310   : > { %v2735_v49 = vpop.f32.mrf.mxu1  ;;  %1650 = vmax.xlane.f32.xlu0 %v1649_v47 }
 0x311   : > { %v3553_v48 = vpop.f32.mrf.mxu0 }
 0x312   : > { %v1658_v50 = vsel %vm1271_vm2, %v3553_v48, -inf  ;;  %v1453_v52 = vpop.f32.mrf.mxu1 }
 0x313   : > { %1659 = vmax.xlane.f32.xlu1 %v1658_v50  ;;  %v2753_v51 = vpop.f32.mrf.mxu0  ;;  %v1265_v52 = vpack.c.bf16 %v3522_v8, %v3522_v8 }
 0x314   : > { %v2736_v2 = vpop.f32.mrf.mxu1 }
 0x315   : > { %v1591_v53 = vpop.f32.mrf.mxu0 }
 0x316   : > { %v1542_v54 = vpop.f32.mrf.mxu1 }
 0x317   : > { %v2754_v3 = vpop.f32.mrf.mxu0  ;;  %v1655_v55 = vsel %vm1271_vm2, %v1542_v54, -inf }
 0x318   : > { %v2747_v56 = vpop.f32.mrf.mxu1  ;;  %1656 = vmax.xlane.f32.xlu0 %v1655_v55 }
 0x31a   : > { %v1545_v57 = vpop.f32.mrf.mxu1 }
 0x31c   : > { %v2748_v4 = vpop.f32.mrf.mxu1 }
 0x31e   : > { %v1634_v5 = vpop.f32.mrf.mxu1 }
 0x31f   : > { %v1661_v58 = vsel %vm1271_vm2, %v1634_v5, -inf }
 0x320   : > { %v2759_v59 = vpop.f32.mrf.mxu1  ;;  %1662 = vmax.xlane.f32.xlu0 %v1661_v58 }
 0x322   : > { %v1637_v62 = vpop.f32.mrf.mxu1 }
 0x324   : > { %694 = vrot.lane.b32.xlu1 %v3302_v12, %s3124_s9  ;;  %v2760_v63 = vpop.f32.mrf.mxu1 }
 0x336   : > { %691 = vrot.lane.b32.xlu0 %v3302_v12, %s3121_s5 }
 0x381   : > { %v1642_v0 = vpop.xlane.xlu0 %1641 }
 0x382   : > { %v1664_v1 = vsub.f32 %v1312_v29, %v1642_v0 }
 0x384   : > { %v1672_v6 = vmul.f32 1.442695, %v1664_v1  ;;  %v1266_v1 = vpack.c.bf16 %v3524_v9, %v3524_v9 }
 0x386   : > { %2928 = vpow2.f32 %v1672_v6  ;;  %v1879_v9 = vsel %vm1739_vm3, %v1266_v1, 0 }
 0x391   : > { %v1648_v7 = vpop.xlane.xlu0 %1647 }
 0x392   : > { %v1666_v13 = vsub.f32 %v1404_v44, %v1648_v7 }
 0x393   : > { %v2929_v11 = vpop.eup %2928 }
 0x394   : > { %v1654_v60 = vpop.xlane.xlu1 %1653  ;;  %v1688_v61 = vsel %vm1271_vm2, %v2929_v11, 0.0  ;;  %v1676_v14 = vmul.f32 1.442695, %v1666_v13 }
 0x395   : > { %v1668_v16 = vsub.f32 %v1496_v38, %v1654_v60  ;;  %1689 = vadd.xlane.f32.xlu1 %v1688_v61 }
 0x396   : > { %2930 = vpow2.f32 %v1676_v14 }
 0x397   : > { %v1680_v17 = vmul.f32 1.442695, %v1668_v16 }
 0x398   : > { %v1645_v18 = vpop.xlane.xlu1 %1644 }
 0x399   : > { %2932 = vpow2.f32 %v1680_v17  ;;  %v1665_v22 = vsub.f32 %v1358_v35, %v1645_v18  ;;  %v1651_v23 = vpop.xlane.xlu0 %1650 }
 0x39a   : > { %v1667_v26 = vsub.f32 %v1450_v25, %v1651_v23 }
 0x39b   : > { %v1674_v24 = vmul.f32 1.442695, %v1665_v22 }
 0x39c   : > { %v1678_v27 = vmul.f32 1.442695, %v1667_v26  ;;  %v1660_v42 = vpop.xlane.xlu1 %1659 }
 0x39d   : > { %2934 = vpow2.f32 %v1674_v24  ;;  %v1670_v46 = vsub.f32 %v3553_v48, %v1660_v42 }
 0x39e   : > { %2936 = vpow2.f32 %v1678_v27 }
 0x39f   : > { %v1684_v15 = vmul.f32 1.442695, %v1670_v46 }
 0x3a0   : > { %v695_v47 = vpop.permute.xlu1 %694 }
 0x3a1   : > { %v1657_v28 = vpop.xlane.xlu0 %1656 }
 0x3a2   : > { %v1669_v29 = vsub.f32 %v1542_v54, %v1657_v28  ;;  %v1833_v54 = vsel %vm1739_vm3, %v1265_v52, 0 }
 0x3a3   : > { %v2931_v30 = vpop.eup %2930 }
 0x3a4   : > { %v1682_v31 = vmul.f32 1.442695, %v1669_v29  ;;  %v1694_v32 = vsel %vm1271_vm2, %v2931_v30, 0.0 }
 0x3a5   : > { %1695 = vadd.xlane.f32.xlu1 %v1694_v32 }
 0x3a6   : > { %v3565_v33 = vpop.eup %2932  ;;  %2938 = vpow2.f32 %v1682_v31 }
 0x3a7   : > { %v1700_v36 = vsel %vm1271_vm2, %v3565_v33, 0.0 }
 0x3a8   : > { %1701 = vadd.xlane.f32.xlu0 %v1700_v36 }
 0x3a9   : > { %v1663_v39 = vpop.xlane.xlu0 %1662 }
 0x3aa   : > { %v2935_v35 = vpop.eup %2934  ;;  %v1671_v40 = vsub.f32 %v1634_v5, %v1663_v39 }
 0x3ab   : > { %v1691_v37 = vsel %vm1271_vm2, %v2935_v35, 0.0  ;;  %v3570_v43 = vpop.eup %2936 }
 0x3ac   : > { %1692 = vadd.xlane.f32.xlu0 %v1691_v37  ;;  %v1697_v44 = vsel %vm1271_vm2, %v3570_v43, 0.0  ;;  %v1686_v45 = vmul.f32 1.442695, %v1671_v40 }
 0x3ad   : > { %v692_v48 = vpop.permute.xlu0 %691 }
 0x3ae   : > { %2940 = vpow2.f32 %v1686_v45 }
 0x3af   : > { %2942 = vpow2.f32 %v1684_v15 }
 0x3b0   : > { %1698 = vadd.xlane.f32.xlu0 %v1697_v44 }
 0x3b3   : > { %v3574_v10 = vpop.eup %2938 }
 0x3b4   : > { %v1703_v38 = vsel %vm1271_vm2, %v3574_v10, 0.0 }
 0x3b5   : > { %1704 = vadd.xlane.f32.xlu1 %v1703_v38 }
 0x3bb   : > { %v3583_v19 = vpop.eup %2940 }
 0x3bc   : > { %v1709_v20 = vsel %vm1271_vm2, %v3583_v19, 0.0  ;;  %v3587_v25 = vpop.eup %2942 }
 0x3c6   : > { %700 = vrot.lane.b32.xlu0 %v3302_v12, %s3126_s20  ;;  %697 = vrot.lane.b32.xlu1 %v3302_v12, %s3123_s8  ;;  %v1706_v12 = vsel %vm1271_vm2, %v3587_v25, 0.0  ;;  %s241_s8 = scalar_lea.vmem [#allocation8], %s2605_s10 }
 0x3c7   : > { %s2508_s9 = sshll.u32 %s241_s8, 4  ;;  %s3709_s9 = int_to_ptr.vmem [resolvable:$true] %s2508_s9 }
 0x3c8   : > { %s3041_s10 = scalar_lea.vmem %s3709_s9, 128 }
 0x3c9   : > { %p3042_p11 = scmp.ne.s32.totalorder %s3709_s9, %s3041_s10 }
 0x3cb   : > { %p3043_p1 = pnand %p3042_p11, %p3771_p0 }
 0x3cd   : > { %p3044_p2 = pneg %p3043_p1 }
 0x3e5   : > { %1710 = vadd.xlane.f32.xlu0 %v1709_v20 }
 0x3ea   : > { %1707 = vadd.xlane.f32.xlu1 %v1706_v12 }
 0x41e   : > { %v1690_v49 = vpop.xlane.xlu1 %1689 }
 0x41f   : > { %2944 = vrcp.f32 %v1690_v49 }
 0x42c   : > { %v2945_v50 = vpop.eup %2944 }
 0x42d   : > { %v1720_v51 = vmul.f32 %v2945_v50, %v2929_v11 }
 0x42e   : > { %v1696_v53 = vpop.xlane.xlu1 %1695 }
 0x42f   : > { %v1728_v2 = vpack.c.bf16 %v1720_v51, %v1720_v51  ;;  %2946 = vrcp.f32 %v1696_v53 }
 0x431   : > { %v1702_v3 = vpop.xlane.xlu0 %1701  ;;  %2764 = vmatmul.mubr.msk.bf16.vlgmr.msra.gmra.mxu0 %vm1271_vm2, %v1728_v2 }
 0x432   : > { %2774 = vmatpush3.bf16.msra.mxu0 %v1833_v54  ;;  %2775 = vmatprep.mubr.msk.bf16.mxu0 %vm3128_vm1, %v3127_v21 }
 0x433   : > { %2785 = vmatprep.subr.bf16.mxu0 %v3127_v21 }
 0x435   : > { %v1693_v55 = vpop.xlane.xlu0 %1692 }
 0x436   : > { %2948 = vrcp.f32 %v1693_v55 }
 0x439   : > { %v1699_v56 = vpop.xlane.xlu0 %1698 }
 0x43a   : > { %2950 = vrcp.f32 %v1699_v56 }
 0x43b   : > { %2952 = vrcp.f32 %v1702_v3 }
 0x43c   : > { %v2947_v57 = vpop.eup %2946 }
 0x43d   : > { %v701_v8 = vpop.permute.xlu0 %700  ;;  %v1722_v4 = vmul.f32 %v2947_v57, %v2931_v30 }
 0x43e   : > { %v1705_v5 = vpop.xlane.xlu1 %1704  ;;  %v751_v59 = vcombine.low %v695_v47, %v701_v8  ;;  %v752_v62 = vcombine.high %v695_v47, %v701_v8 }
 0x43f   : > { %v1730_v58 = vpack.c.bf16 %v1722_v4, %v1722_v4  ;;  %2954 = vrcp.f32 %v1705_v5 }
 0x440   : > { %v759_v13 = vrot.slane %v751_v59, %v3337_v34  ;;  %v766_v60 = vrot.slane %v752_v62, %v3337_v34 }
 0x441   : > { %2776 = vmatmul.mubr.msk.bf16.vlgmr.msra.gmra.mxu0 %vm1271_vm2, %v1730_v58 }
 0x442   : > { %v698_v0 = vpop.permute.xlu1 %697  ;;  %2787 = vmatprep.mubr.msk.bf16.mxu0 %vm3128_vm1, %v3127_v21 }
 0x443   : > { %v2949_v63 = vpop.eup %2948  ;;  %v735_v6 = vcombine.low %v692_v48, %v698_v0  ;;  %v736_v7 = vcombine.high %v692_v48, %v698_v0 }
 0x444   : > { %v1721_v11 = vmul.f32 %v2949_v63, %v2935_v35 }
 0x445   : > { %v743_v61 = vrot.slane %v735_v6, %v3337_v34  ;;  %v750_v14 = vrot.slane %v736_v7, %v3337_v34 }
 0x446   : > { %v1729_v16 = vpack.c.bf16 %v1721_v11, %v1721_v11 }
 0x447   : > { %v2951_v17 = vpop.eup %2950  ;;  %v799_v18 = vcombine.low %v743_v61, %v759_v13  ;;  %v800_v22 = vcombine.high %v743_v61, %v759_v13  ;;  %v815_v23 = vcombine.low %v750_v14, %v766_v60  ;;  %v816_v24 = vcombine.high %v750_v14, %v766_v60 }
 0x448   : > { %2770 = vmatmul.mubr.msk.bf16.vlgmr.msra.gmra.mxu1 %vm1271_vm2, %v1729_v16  ;;  %v1723_v26 = vmul.f32 %v2951_v17, %v3570_v43  ;;  %v2953_v15 = vpop.eup %2952 }
 0x449   : > { %2780 = vmatpush3.bf16.msra.mxu1 %v1879_v9  ;;  %2781 = vmatprep.mubr.msk.bf16.mxu1 %vm3128_vm1, %v3127_v21  ;;  %v807_v27 = vrot.slane %v799_v18, %v3339_v41  ;;  %v814_v28 = vrot.slane %v800_v22, %v3339_v41  ;;  %v823_v29 = vrot.slane %v815_v23, %v3339_v41 }
 0x44a   : > { %v830_v30 = vrot.slane %v816_v24, %v3339_v41  ;;  %2791 = vmatprep.subr.bf16.mxu1 %v3127_v21  ;;  %v1731_v37 = vpack.c.bf16 %v1723_v26, %v1723_v26  ;;  %v1724_v54 = vmul.f32 %v2953_v15, %v3565_v33 }
 0x44b   : > { %v2635_v31 = vcombine.low %v807_v27, %v814_v28  ;;  %v2637_v32 = vcombine.high %v807_v27, %v814_v28 }
 0x44c   : > { %v2639_v36 = vcombine.low %v823_v29, %v830_v30  ;;  %v2641_v35 = vcombine.high %v823_v29, %v830_v30  ;;  %v2955_v50 = vpop.eup %2954  ;;  %v1732_v5 = vpack.c.bf16 %v1724_v54, %v1724_v54  ;;  %v2925_v54 = vld [vmem:[#allocation7 + $0x10] sm:$0xff]  }
 0x44d   : > { %v1142_v44 = vrot.slane %v2635_v31, %v3337_v34  ;;  %v1158_v38 = vrot.slane %v2637_v32, %v3337_v34  ;;  %v1725_v55 = vmul.f32 %v2955_v50, %v3574_v10  ;;  %v2924_v50 = vld [vmem:[#allocation7 + $0x18] sm:$0xff]  }
 0x44e   : > { %v1174_v43 = vrot.slane %v2639_v36, %v3337_v34  ;;  %v1190_v39 = vrot.slane %v2641_v35, %v3337_v34 }
 0x44f   : > { %v1207_v40 = vcombine.low %v1142_v44, %v1158_v38  ;;  %v1208_v45 = vcombine.high %v1142_v44, %v1158_v38  ;;  %v1733_v58 = vpack.c.bf16 %v1725_v55, %v1725_v55 }
 0x450   : > { %2782 = vmatmul.mubr.msk.bf16.vlgmr.msra.gmra.mxu1 %vm1271_vm2, %v1731_v37  ;;  %v1239_v42 = vcombine.low %v1174_v43, %v1190_v39  ;;  %v1240_v46 = vcombine.high %v1174_v43, %v1190_v39 }
 0x451   : > { %2793 = vmatprep.mubr.msk.bf16.mxu1 %vm3128_vm1, %v3127_v21  ;;  %v1215_v20 = vrot.slane %v1207_v40, %v3339_v41  ;;  %v1222_v47 = vrot.slane %v1208_v45, %v3339_v41 }
 0x452   : > { %v1247_v12 = vrot.slane %v1239_v42, %v3339_v41  ;;  %v1254_v49 = vrot.slane %v1240_v46, %v3339_v41 }
 0x454   : > { %v1259_v48 = vcombine.low %v1215_v20, %v1247_v12  ;;  %v1260_v51 = vcombine.high %v1215_v20, %v1247_v12  ;;  %v1261_v52 = vcombine.low %v1222_v47, %v1254_v49  ;;  %v1262_v53 = vcombine.high %v1222_v47, %v1254_v49 }
 0x456   : > { %v1267_v2 = vpack.c.bf16 %v1259_v48, %v1259_v48  ;;  %v1268_v3 = vpack.c.bf16 %v1260_v51, %v1260_v51  ;;  %v1269_v8 = vpack.c.bf16 %v1261_v52, %v1261_v52  ;;  %v1270_v4 = vpack.c.bf16 %v1262_v53, %v1262_v53 }
 0x458   : > { %v1925_v56 = vsel %vm1739_vm3, %v1267_v2, 0  ;;  %v1971_v57 = vsel %vm1739_vm3, %v1268_v3, 0  ;;  %v2017_v33 = vsel %vm1739_vm3, %v1269_v8, 0  ;;  %v2063_v10 = vsel %vm1739_vm3, %v1270_v4, 0 }
 0x459   : > { %2786 = vmatpush3.bf16.msra.mxu0 %v1925_v56  ;;  %2792 = vmatpush3.bf16.msra.mxu1 %v1971_v57 }
 0x45a   : > { %2797 = vmatprep.subr.bf16.mxu0 %v3127_v21  ;;  %2803 = vmatprep.subr.bf16.mxu1 %v3127_v21 }
 0x45c   : > { %2788 = vmatmul.mubr.msk.bf16.vlgmr.msra.gmra.mxu0 %vm1271_vm2, %v1732_v5  ;;  %2794 = vmatmul.mubr.msk.bf16.vlgmr.msra.gmra.mxu1 %vm1271_vm2, %v1733_v58 }
 0x45d   : > { %2798 = vmatpush3.bf16.msra.mxu0 %v2017_v33  ;;  %2804 = vmatpush3.bf16.msra.mxu1 %v2063_v10 }
 0x45e   : > { %2805 = vmatprep.mubr.msk.bf16.mxu1 %vm3128_vm1, %v3127_v21  ;;  %2799 = vmatprep.mubr.msk.bf16.mxu0 %vm3128_vm1, %v3127_v21 }
 0x45f   : > { %2809 = vmatprep.subr.bf16.mxu0 %v3127_v21 }
 0x46e   : > { %v1711_v59 = vpop.xlane.xlu0 %1710 }
 0x46f   : > { %2956 = vrcp.f32 %v1711_v59 }
 0x473   : > { %v1708_v62 = vpop.xlane.xlu1 %1707 }
 0x474   : > { %2958 = vrcp.f32 %v1708_v62 }
 0x47c   : > { %v2957_v63 = vpop.eup %2956 }
 0x47d   : > { %v1727_v0 = vmul.f32 %v2957_v63, %v3583_v19 }
 0x47f   : > { %v1735_v1 = vpack.c.bf16 %v1727_v0, %v1727_v0 }
 0x481   : > { %2806 = vmatmul.mubr.msk.bf16.vlgmr.msra.gmra.mxu1 %vm1271_vm2, %v1735_v1  ;;  %v2959_v6 = vpop.eup %2958 }
 0x482   : > { %v1726_v7 = vmul.f32 %v2959_v6, %v3587_v25 }
 0x484   : > { %v1734_v11 = vpack.c.bf16 %v1726_v7, %v1726_v7 }
 0x486   : > { %2800 = vmatmul.mubr.msk.bf16.vlgmr.msra.gmra.mxu0 %vm1271_vm2, %v1734_v11 }
 0x487   : > { %2817 = vmatprep.mubr.msk.bf16.mxu0 %vm3128_vm1, %v3127_v21  ;;  %2810 = vmatpush3.bf16.msra.mxu0 %v2924_v50 }
 0x488   : > { %2811 = vmatprep.subr.bf16.mxu0 %v3127_v21 }
 0x48b   : > { %2812 = vmatpush3.bf16.msra.mxu0 %v2925_v54 }
 0x48c   : > { %2813 = vmatprep.subr.bf16.mxu0 %v3127_v21 }
 0x4f1   : > { %v1777_v13 = vpop.f32.mrf.mxu0 }
 0x4f3   : > { %v2765_v60 = vpop.f32.mrf.mxu0 }
 0x4f5   : > { %v1780_v61 = vpop.f32.mrf.mxu0 }
 0x4f7   : > { %v2766_v14 = vpop.f32.mrf.mxu0 }
 0x501   : > { %v1869_v16 = vpop.f32.mrf.mxu0 }
 0x502   : > { %v2105_v26 = vcombine.low %v1777_v13, %v1869_v16  ;;  %v2106_v25 = vcombine.high %v1777_v13, %v1869_v16 }
 0x503   : > { %v2777_v17 = vpop.f32.mrf.mxu0 }
 0x504   : > { %v2113_v31 = vrot.slane %v2105_v26, %v3337_v34  ;;  %v2120_v32 = vrot.slane %v2106_v25, %v3337_v34 }
 0x505   : > { %v1872_v9 = vpop.f32.mrf.mxu0 }
 0x507   : > { %v2778_v18 = vpop.f32.mrf.mxu0 }
 0x508   : > { %v1823_v19 = vpop.f32.mrf.mxu1 }
 0x50a   : > { %v2771_v22 = vpop.f32.mrf.mxu1 }
 0x50c   : > { %v1826_v23 = vpop.f32.mrf.mxu1 }
 0x50e   : > { %v2772_v24 = vpop.f32.mrf.mxu1 }
 0x510   : > { %v1915_v27 = vpop.f32.mrf.mxu1 }
 0x511   : > { %v2121_v28 = vcombine.low %v1823_v19, %v1915_v27  ;;  %v2122_v29 = vcombine.high %v1823_v19, %v1915_v27 }
 0x512   : > { %v2783_v30 = vpop.f32.mrf.mxu1 }
 0x513   : > { %v2129_v36 = vrot.slane %v2121_v28, %v3337_v34  ;;  %v2136_v35 = vrot.slane %v2122_v29, %v3337_v34 }
 0x514   : > { %v1918_v37 = vpop.f32.mrf.mxu1 }
 0x515   : > { %v2169_v44 = vcombine.low %v2113_v31, %v2129_v36  ;;  %v2170_v38 = vcombine.high %v2113_v31, %v2129_v36  ;;  %v2185_v43 = vcombine.low %v2120_v32, %v2136_v35  ;;  %v2186_v39 = vcombine.high %v2120_v32, %v2136_v35  ;;  %v2926_v35 = vld [vmem:[#allocation7 + $0x8] sm:$0xff]  }
 0x516   : > { %v2784_v40 = vpop.f32.mrf.mxu1  ;;  %2814 = vmatpush3.bf16.msra.mxu0 %v2926_v35 }
 0x517   : > { %v2177_v42 = vrot.slane %v2169_v44, %v3339_v41  ;;  %v2184_v45 = vrot.slane %v2170_v38, %v3339_v41  ;;  %v2193_v46 = vrot.slane %v2185_v43, %v3339_v41  ;;  %v2200_v15 = vrot.slane %v2186_v39, %v3339_v41  ;;  %2815 = vmatprep.subr.bf16.mxu0 %v3127_v21 }
 0x519   : > { %v2658_v20 = vcombine.low %v2177_v42, %v2184_v45  ;;  %v2660_v12 = vcombine.high %v2177_v42, %v2184_v45  ;;  %v2662_v47 = vcombine.low %v2193_v46, %v2200_v15  ;;  %v2664_v49 = vcombine.high %v2193_v46, %v2200_v15 }
 0x51b   : > { %v2249_v48 = vrot.slane %v2658_v20, %v3337_v34  ;;  %v2265_v51 = vrot.slane %v2660_v12, %v3337_v34  ;;  %v2281_v52 = vrot.slane %v2662_v47, %v3337_v34  ;;  %v2297_v53 = vrot.slane %v2664_v49, %v3337_v34  ;;  %v2927_v47 = vld [vmem:[#allocation7] sm:$0xff]  }
 0x51c   : > { %v1961_v2 = vpop.f32.mrf.mxu0  ;;  %v2007_v3 = vpop.f32.mrf.mxu1  ;;  %2816 = vmatpush3.bf16.msra.mxu0 %v2927_v47 }
 0x51d   : > { %v2306_v55 = vcombine.high %v2249_v48, %v2265_v51  ;;  %v2338_v56 = vcombine.high %v2281_v52, %v2297_v53  ;;  %v2305_v57 = vcombine.low %v2249_v48, %v2265_v51  ;;  %v2337_v8 = vcombine.low %v2281_v52, %v2297_v53 }
 0x51e   : > { %v2789_v4 = vpop.f32.mrf.mxu0  ;;  %v2795_v5 = vpop.f32.mrf.mxu1 }
 0x51f   : > { %v2320_v58 = vrot.slane %v2306_v55, %v3339_v41  ;;  %v2352_v33 = vrot.slane %v2338_v56, %v3339_v41  ;;  %v3665_v10 = vrot.slane %v2305_v57, %v3339_v41  ;;  %v3668_v59 = vrot.slane %v2337_v8, %v3339_v41 }
 0x520   : > { %v1964_v62 = vpop.f32.mrf.mxu0  ;;  %v2010_v63 = vpop.f32.mrf.mxu1 }
 0x521   : > { %v2371_v0 = vcombine.low %v2320_v58, %v2352_v33  ;;  %v2370_v1 = vcombine.high %v3665_v10, %v3668_v59  ;;  %v2369_v6 = vcombine.low %v3665_v10, %v3668_v59  ;;  %v2372_v13 = vcombine.high %v2320_v58, %v2352_v33 }
 0x522   : > { %v2790_v7 = vpop.f32.mrf.mxu0  ;;  %v2796_v11 = vpop.f32.mrf.mxu1 }
 0x523   : > { %2382 = vrot.lane.b32.xlu1 %v2371_v0, %s3131_s27  ;;  %2378 = vrot.lane.b32.xlu0 %v2370_v1, %s3132_s28  ;;  %v2666_v7 = vld [vmem:[%s3754_s3] ss:$0 sm:$0xff]  ;;  %s3707_s27 = scalar_lea.hbm %s3755_s4, %s2673_s7 }
 0x527   : > { %2386 = vrot.lane.b32.xlu1 %v2372_v13, %s3133_s26 }
 0x541   : > { %v2099_v60 = vpop.f32.mrf.mxu1 }
 0x542   : > { %v2153_v16 = vcombine.low %v2007_v3, %v2099_v60  ;;  %v2154_v17 = vcombine.high %v2007_v3, %v2099_v60 }
 0x543   : > { %v2807_v61 = vpop.f32.mrf.mxu1 }
 0x544   : > { %v2161_v24 = vrot.slane %v2153_v16, %v3337_v34  ;;  %v2168_v26 = vrot.slane %v2154_v17, %v3337_v34  ;;  %v2960_v61 = vld [vmem:[%s3288_s12] sm:$0xff]  ;;  %s3138_s12 = smov [#allocation8]  }
 0x545   : > { %v2102_v14 = vpop.f32.mrf.mxu1  ;;  %s3045_s28 = sshll.u32 %s3138_s12, 4  ;;  %s3046_s28 = int_to_ptr.vmem [resolvable:$false] %s3045_s28 }
 0x546   : > { %v2053_v19 = vpop.f32.mrf.mxu0  ;;  %s3047_s26 = scalar_lea.vmem %s3046_s28, 256  ;;  %p3048_p6 = scmp.lt.s32.totalorder %s3709_s9, %s3046_s28 }
 0x547   : > { %v2808_v9 = vpop.f32.mrf.mxu1  ;;  %v2137_v18 = vcombine.low %v1961_v2, %v2053_v19  ;;  %v2138_v22 = vcombine.high %v1961_v2, %v2053_v19  ;;  %p3049_p12 = scmp.lt.s32.totalorder %s3047_s26, %s3041_s10 }
 0x548   : > { %v2801_v23 = vpop.f32.mrf.mxu0 }
 0x549   : > { %v2145_v25 = vrot.slane %v2137_v18, %v3337_v34  ;;  %v2152_v27 = vrot.slane %v2138_v22, %v3337_v34  ;;  %p3050_p3 = por %p3049_p12, %p3048_p6 }
 0x54a   : > { %v2056_v28 = vpop.f32.mrf.mxu0 }
 0x54b   : > { %v2201_v29 = vcombine.low %v2145_v25, %v2161_v24  ;;  %v2202_v30 = vcombine.high %v2145_v25, %v2161_v24  ;;  %v2217_v31 = vcombine.low %v2152_v27, %v2168_v26  ;;  %v2218_v32 = vcombine.high %v2152_v27, %v2168_v26  ;;  %p3051_p9 = pnand %p3050_p3, %p3044_p2 }
 0x54c   : > { %v2802_v36 = vpop.f32.mrf.mxu0 }
 0x54d   : > { %v2209_v37 = vrot.slane %v2201_v29, %v3339_v41  ;;  %v2216_v44 = vrot.slane %v2202_v30, %v3339_v41  ;;  %v2225_v38 = vrot.slane %v2217_v31, %v3339_v41  ;;  %v2232_v43 = vrot.slane %v2218_v32, %v3339_v41 }
 0x54f   : > { %v2659_v39 = vcombine.low %v2209_v37, %v2216_v44  ;;  %v2661_v40 = vcombine.high %v2209_v37, %v2216_v44  ;;  %v2663_v42 = vcombine.low %v2225_v38, %v2232_v43  ;;  %v2665_v45 = vcombine.high %v2225_v38, %v2232_v43 }
 0x551   : > { %v2256_v46 = vrot.slane %v2659_v39, %v3337_v34  ;;  %v2272_v15 = vrot.slane %v2661_v40, %v3337_v34  ;;  %v2288_v20 = vrot.slane %v2663_v42, %v3337_v34  ;;  %v2304_v12 = vrot.slane %v2665_v45, %v3337_v34 }
 0x553   : > { %v2321_v49 = vcombine.low %v2256_v46, %v2272_v15  ;;  %v2353_v50 = vcombine.low %v2288_v20, %v2304_v12  ;;  %v2322_v48 = vcombine.high %v2256_v46, %v2272_v15  ;;  %v2354_v51 = vcombine.high %v2288_v20, %v2304_v12 }
 0x555   : > { %v2329_v52 = vrot.slane %v2321_v49, %v3339_v41  ;;  %v2361_v53 = vrot.slane %v2353_v50, %v3339_v41  ;;  %v2336_v3 = vrot.slane %v2322_v48, %v3339_v41  ;;  %v2368_v54 = vrot.slane %v2354_v51, %v3339_v41 }
 0x557   : > { %v2374_v2 = vcombine.high %v2329_v52, %v2361_v53  ;;  %v2373_v21 = vcombine.low %v2329_v52, %v2361_v53  ;;  %v2376_v34 = vcombine.high %v2336_v3, %v2368_v54  ;;  %v2375_v55 = vcombine.low %v2336_v3, %v2368_v54 }
 0x559   : > { %2394 = vrot.lane.b32.xlu1 %v2374_v2, %s3134_s29  ;;  %2390 = vrot.lane.b32.xlu0 %v2373_v21, %s3135_s30 }
 0x55d   : > { %2402 = vrot.lane.b32.xlu1 %v2376_v34, %s3136_s11  ;;  %2398 = vrot.lane.b32.xlu0 %v2375_v55, %s3137_s21 }
 0x595   : > { %v2383_v56 = vpop.permute.xlu1 %2382  ;;  %v2379_v57 = vpop.permute.xlu0 %2378 }
 0x596   : > { %v2405_v8 = vsel %vm1271_vm2, %v2369_v6, %v2379_v57 }
 0x597   : > { %v2407_v41 = vsel %vm2406_vm4, %v2405_v8, %v2383_v56 }
 0x599   : > { %v2387_v4 = vpop.permute.xlu1 %2386 }
 0x59a   : > { %v2409_v5 = vsel %vm2408_vm5, %v2407_v41, %v2387_v4 }
 0x5cb   : > { %v2395_v58 = vpop.permute.xlu1 %2394  ;;  %v2391_v33 = vpop.permute.xlu0 %2390 }
 0x5cc   : > { %v2411_v62 = vsel %vm2410_vm6, %v2409_v5, %v2391_v33 }
 0x5cd   : > { %v2413_v0 = vsel %vm2412_vm7, %v2411_v62, %v2395_v58 }
 0x5cf   : > { %v2403_v63 = vpop.permute.xlu1 %2402  ;;  %v2399_v10 = vpop.permute.xlu0 %2398 }
 0x5d0   : > { %v2415_v59 = vsel %vm2414_vm8, %v2413_v0, %v2399_v10 }
 0x5d1   : > { %v2417_v1 = vsel %vm2416_vm9, %v2415_v59, %v2403_v63 }
 0x5d2   : > { %v2418_v6 = vpack.c.bf16 %v2417_v1, %v2417_v1 }
 0x5d4   : > { %2818 = vmatmul.mubr.msk.bf16.vlgmr.msra.gmra.mxu0 %vm302_vm0, %v2418_v6 }
 0x694   : > { %v2486_v11 = vpop.f32.mrf.mxu0 }
 0x695   : > { %v2487_v13 = vadd.f32 %v2666_v7, %v2486_v11 }
 0x696   : > { %v2819_v60 = vpop.f32.mrf.mxu0 }
 0x697   : > { %v2492_v14 = vadd.f32 %v2960_v61, %v2487_v13 }
 0x698   : > { %v2489_v16 = vpop.f32.mrf.mxu0 }
 0x699   : > { %2493 = vst.msk [vmem:[%s241_s8] sm:$0xff] %vm302_vm0, %v2492_v14 }
 0x69a   : > { %v2820_v17 = vpop.f32.mrf.mxu0 }
 0x69b   : > { %3054 = shalt.err (!%p3051_p9)
}
 0x69c   : > { %s3055_s29 = scalar_lea.hbm %s3707_s27, 128  ;;  %s3059_s11 = scalar_lea.hbm %s3755_s4, 256 }
 0x69d   : > { %p3056_p13 = scmp.ne.s32.totalorder %s3707_s27, %s3055_s29  ;;  %p3060_p4 = scmp.lt.s32.totalorder %s3707_s27, %s3755_s4 }
 0x69e   : > { %p3061_p8 = scmp.lt.s32.totalorder %s3059_s11, %s3055_s29 }
 0x69f   : > { %p3057_p5 = pnand %p3056_p13, %p3771_p0 }
 0x6a0   : > { %p3062_p7 = por %p3061_p8, %p3060_p4 }
 0x6a1   : > { %p3058_p10 = pneg %p3057_p5 }
 0x6a3   : > { %p3063_p11 = pnand %p3062_p7, %p3058_p10 }
 0x6a5   : > { %3066 = shalt.err (!%p3063_p11)
}
 0x6a6   : > { %2831 = dma.vmem_to_hbm [thread:$0]  (%p3771_p0), %s3709_s9, 128, %s3707_s27, %s2495_s19  }
 0x6a7 PF: > { %s2520_s5 = sand.u32 1, %s3097_s15   ;;  %p3772_p1 = scmp.ne.s32.totalorder %s3761_s22, 0 }
 0x6a8   : > { %p3773_p2 = scmp.ge.s32.totalorder %s3109_s18, 2  ;;  %s2521_s7 = scalar_lea.sflag [#allocation4], %s2520_s5 }
 0x6aa   : > { %p2845_p6 = pnand %p3773_p2, %p3772_p1 }
 0x6ac   : > { %p2846_p12 = pneg %p2845_p6 }
 0x6ae   : > { %3092 = dma.done.wait (%p2846_p12), %s2521_s7, 128  }
 0x6af   : > { %3094 = vsyncadd (%p2846_p12), %s2521_s7, 4294967168  ;;  %p18_p3 = scmp.ge.s32.totalorder %s3236_s13, 4   ;;  %s3774_s15 = smov %s3101_s16 }
 0x6b0   : > { %s3775_s16 = smov %s3105_s17  ;;  %s3776_s17 = smov %s3245_s24 }
 0x6b1   : > { %s3777_s18 = smov %s3236_s13  ;;  %20 = sbr.rel (!%p18_p3) target bundleno = 6 (0x6), region = 89 }
 0x6b6   :  { %2526 = vsyncpa [#allocation3], 1 }
 0x6b7   :  { %2528 = vsyncpa [#allocation3 + $0x1], 1 }
 0x6b8   :  { %2529 = vsyncpa [#allocation6], 1 }
 0x6b9   :  { %2530 = vsyncpa [#allocation4], 1 }
 0x6ba   :  { %2532 = vsyncpa [#allocation4 + $0x1], 1 }

</bundles_post_ra>
